<compile_context>
chip_gen: v7x
topology: tpu7x:2x2x1
jax: 0.10.0
libtpu: 0.0.40
codegen_flags: <defaults>
</compile_context>

<pallas_src>
import functools

import jax
import jax.numpy as jnp
import numpy as np
from jax.experimental import pallas as pl
from jax.experimental.pallas import tpu as pltpu

LANE = 128


def _round_up(x, m):
    return (x + m - 1) // m * m


def _cnn_kernel(pad_l, chunks, x_ref, wconv_ref, bconv_ref, w1_ref, b1_ref,
                w2_ref, b2_ref, out_ref, xpad_ref):
    """One batch tile: fused multi-size conv + global max-pool + fc1 + fc2."""
    TB, L, E = x_ref.shape
    fmax = wconv_ref.shape[0]
    NOUT = wconv_ref.shape[2]

    # Build the "same"-padded sequence once in VMEM (pad never touches HBM).
    xpad_ref[...] = jnp.zeros_like(xpad_ref)
    xpad_ref[:, pad_l:pad_l + L, :] = x_ref[...]

    # Fused conv (all filter sizes share one weight whose columns are tightly
    # packed) as fmax accumulated matmuls, streamed over L-chunks with a
    # running max so the f32 intermediate stays (TB*lc, NOUT).
    feats = jnp.full((TB, NOUT), -jnp.inf, dtype=jnp.float32)
    for c0, lc in chunks:                              # static, unrolled
        acc = jnp.zeros((TB * lc, NOUT), jnp.float32)
        for t in range(fmax):                          # static, unrolled tap loop
            xs = xpad_ref[:, c0 + t:c0 + t + lc, :]    # (TB, lc, E) bf16
            acc = acc + jnp.dot(xs.reshape(TB * lc, E), wconv_ref[t],
                                preferred_element_type=jnp.float32)
        feats = jnp.maximum(feats, jnp.max(acc.reshape(TB, lc, NOUT), axis=1))
    # Conv bias is constant over L and there is no nonlinearity before the
    # max-pool, so adding it once after the max is exact.
    feats = feats + bconv_ref[...]                     # (TB, NOUT) f32

    h = jnp.dot(feats.astype(jnp.bfloat16), w1_ref[...],
                preferred_element_type=jnp.float32) + b1_ref[...]      # (TB, Hp)
    # TODO(synk): dropout is identity at inference (eval mode); not applied.
    logits = jnp.dot(h.astype(jnp.bfloat16), w2_ref[...],
                     preferred_element_type=jnp.float32) + b2_ref[...]  # (TB, Cp)
    out_ref[...] = logits.astype(out_ref.dtype)


def cnn_forward(tokens, params, filter_sizes, *, block_b=None):
    emb = params["embeddings"]                          # (V, E) f32
    B, L = tokens.shape
    E = emb.shape[1]
    NF = params["conv_w"][0].shape[2]
    H = params["fc1_w"].shape[1]
    C = params["fc2_w"].shape[1]
    nF = len(filter_sizes)
    fmax = max(filter_sizes)

    # ---- TPU-generation dependent knobs --------------------------------
    try:
        kind = jax.devices()[0].device_kind.lower()
    except Exception:
        kind = ""
    is_v5 = "v5" in kind
    is_v6 = "v6" in kind
    # v5e/v6e: 128 MiB physical VMEM -> 96 MiB budget; v7x: 64 MiB -> 48 MiB.
    vmem_limit = (96 if (is_v5 or is_v6) else 48) * 1024 * 1024
    tb_cap = 128 if is_v5 else 256        # 128x128 MXU on v5e, 256x256 on v6e/v7x
    lc_cap = 128 if is_v5 else 256        # M-chunk rows per conv matmul

    # ---- tight-packed, lane-dense feature dims --------------------------
    NOUT = _round_up(nF * NF, LANE)       # all filters packed contiguously
    if not is_v5 and NOUT > LANE:         # avoid partial passes on 256-wide MXU
        NOUT = _round_up(nF * NF, 2 * LANE)
    Hp = _round_up(H, LANE)
    Cp = _round_up(C, LANE)

    # PyTorch "same"-style padding of the LARGEST filter; smaller filters read
    # shifted windows of the same shared padded buffer (built in VMEM in-kernel).
    pad_l = (fmax - 1) // 2
    Lp = L + fmax - 1

    # ---- one-time parameter repacking (tightly packed, bf16 matmul ops) -
    # Fused conv weight (fmax, E, NOUT): filter i (size f) with left-pad offset
    # off_i = pad_l - (f-1)//2 owns columns [i*NF, (i+1)*NF) at taps
    # t = off_i .. off_i+f-1; everything else stays zero.
    wconv = jnp.zeros((fmax, E, NOUT), jnp.float32)
    bconv = jnp.zeros((1, NOUT), jnp.float32)
    for i, f in enumerate(filter_sizes):
        off = pad_l - (f - 1) // 2
        for tt in range(f):
            wconv = wconv.at[off + tt, :, i * NF:(i + 1) * NF].set(
                params["conv_w"][i][tt])
        bconv = bconv.at[:, i * NF:(i + 1) * NF].set(params["conv_b"][i])

    # fc1 rows already match the tightly packed (nF*NF) feature layout.
    w1 = jnp.zeros((NOUT, Hp), jnp.float32).at[:nF * NF, :H].set(params["fc1_w"])
    b1 = jnp.zeros((1, Hp), jnp.float32).at[:, :H].set(params["fc1_b"])
    w2 = jnp.zeros((Hp, Cp), jnp.float32).at[:H, :C].set(params["fc2_w"])
    b2 = jnp.zeros((1, Cp), jnp.float32).at[:, :C].set(params["fc2_b"])
    wconv = wconv.astype(jnp.bfloat16)
    w1 = w1.astype(jnp.bfloat16)
    w2 = w2.astype(jnp.bfloat16)

    # ---- sequence chunking for the running-max conv ---------------------
    LC = min(L, lc_cap)
    chunks = tuple((s, min(LC, L - s)) for s in range(0, L, LC))
    lc_max = max(sz for _, sz in chunks)

    # ---- batch-tile sizing from an accurately accounted VMEM budget -----
    fixed = (2 * (fmax * E * NOUT + NOUT * Hp + Hp * Cp) * 2   # dbl-buffered bf16 weights
             + 2 * (NOUT + Hp + Cp) * 4)                       # dbl-buffered f32 biases
    per_row = (2 * L * E * 2          # double-buffered bf16 input tile
               + Lp * E * 2           # VMEM pad scratch
               + 2 * lc_max * E * 2   # shifted tap slice + reshaped matmul operand
               + lc_max * NOUT * 4    # f32 conv accumulator (per chunk)
               + 4 * NOUT * 4         # chunk-max / running feats / bf16 copy
               + 3 * Hp * 4           # h + bf16 copy
               + Cp * 4               # logits
               + 2 * Cp * 4)          # double-buffered f32 output tile
    budget = int(vmem_limit * 0.8)    # headroom for compiler-internal scratch
    tb_fit = max(8, ((budget - fixed) // per_row) // 8 * 8)

    B8 = _round_up(B, 8)
    if block_b is not None:
        TB = block_b
    else:
        TB = max(8, min(tb_cap, tb_fit, B8))
        # v7x (2 TensorCores): prefer >= 2 batch grid steps so both cores work
        # and the prologue DMA overlaps with compute.
        if not (is_v5 or is_v6) and B8 >= 16 and B8 // TB < 2:
            TB = max(8, _round_up((B8 + 1) // 2, 8))
    Bp = _round_up(B, TB)

    # ---- embedding gather: bf16 table, no E / L padding in HBM ----------
    # TODO(synk): move the gather in-kernel via PrefetchScalarGridSpec with the
    # token ids so the (Bp, L, E) activation tensor never materializes in HBM.
    tok = jnp.pad(tokens, ((0, Bp - B), (0, 0)))
    x = jnp.take(params["embeddings"].astype(jnp.bfloat16), tok, axis=0)  # (Bp, L, E)

    def full(shape):
        return pl.BlockSpec(shape, lambda b: (0,) * len(shape))

    kernel = functools.partial(_cnn_kernel, pad_l, chunks)
    out = pl.pallas_call(
        kernel,
        out_shape=jax.ShapeDtypeStruct((Bp, Cp), jnp.float32),
        grid=(Bp // TB,),
        in_specs=[
            pl.BlockSpec((TB, L, E), lambda b: (b, 0, 0)),  # batch-tiled activations
            full((fmax, E, NOUT)),                          # fused conv weight
            full((1, NOUT)),                                # fused conv bias
            full((NOUT, Hp)),
            full((1, Hp)),
            full((Hp, Cp)),
            full((1, Cp)),
        ],
        out_specs=pl.BlockSpec((TB, Cp), lambda b: (b, 0)),
        scratch_shapes=[pltpu.VMEM((TB, Lp, E), jnp.bfloat16)],
        compiler_params=pltpu.CompilerParams(
            dimension_semantics=("parallel",),
            vmem_limit_bytes=vmem_limit,
        ),
    )(x, wconv, bconv, w1, b1, w2, b2)
    return out[:B, :C]


def ref_forward(tokens, params, filter_sizes):
    """Pure-JAX f32 reference mirroring the PyTorch forward (NCL conv)."""
    x = jnp.take(params["embeddings"], tokens, axis=0)          # (B, L, E)
    x = jnp.transpose(x, (0, 2, 1))                             # (B, E, L)
    feats = []
    for i, f in enumerate(filter_sizes):
        pad_l = (f - 1) // 2
        pad_r = (f - 1) - pad_l
        w = jnp.transpose(params["conv_w"][i], (2, 1, 0))       # (f,E,NF) -> (NF,E,f)
        z = jax.lax.conv_general_dilated(
            x, w, window_strides=(1,), padding=[(pad_l, pad_r)],
            dimension_numbers=("NCH", "OIH", "NCH"))
        z = z + params["conv_b"][i].reshape(1, -1, 1)
        feats.append(jnp.max(z, axis=2))                        # (B, NF)
    z = jnp.concatenate(feats, axis=1)
    z = z @ params["fc1_w"] + params["fc1_b"]
    z = z @ params["fc2_w"] + params["fc2_b"]
    return z


def init_params(key, vocab_size, E, NF, filter_sizes, H, C, padding_idx=0):
    n_keys = 1 + 2 * len(filter_sizes) + 4
    keys = list(jax.random.split(key, n_keys))
    p = {}
    emb = 0.1 * jax.random.normal(keys.pop(), (vocab_size, E), jnp.float32)
    emb = emb.at[padding_idx].set(0.0)                          # nn.Embedding padding_idx row
    p["embeddings"] = emb
    p["conv_w"], p["conv_b"] = [], []
    for f in filter_sizes:
        p["conv_w"].append(0.1 * jax.random.normal(keys.pop(), (f, E, NF), jnp.float32))
        p["conv_b"].append(0.1 * jax.random.normal(keys.pop(), (1, NF), jnp.float32))
    p["fc1_w"] = 0.1 * jax.random.normal(keys.pop(), (NF * len(filter_sizes), H), jnp.float32)
    p["fc1_b"] = 0.1 * jax.random.normal(keys.pop(), (1, H), jnp.float32)
    p["fc2_w"] = 0.1 * jax.random.normal(keys.pop(), (H, C), jnp.float32)
    p["fc2_b"] = 0.1 * jax.random.normal(keys.pop(), (1, C), jnp.float32)
    return p


if __name__ == "__main__":
    B, L = 2, 8
    vocab_size, embedding_dim = 50, 32
    num_filters, filter_sizes = 16, [1, 2, 3]
    hidden_dim, num_classes = 32, 4

    key = jax.random.PRNGKey(0)
    k_params, k_tok = jax.random.split(key)
    params = init_params(k_params, vocab_size, embedding_dim, num_filters,
                         filter_sizes, hidden_dim, num_classes)
    tokens = jax.random.randint(k_tok, (B, L), 0, vocab_size, dtype=jnp.int32)

    out = cnn_forward(tokens, params, filter_sizes)
    out = jax.block_until_ready(out)

    ref = jax.block_until_ready(ref_forward(tokens, params, filter_sizes))
    # Tolerance loosened vs the f32 reference because matmul operands (incl. the
    # embedding table) are bf16 with f32 accumulation.
    np.testing.assert_allclose(np.asarray(out), np.asarray(ref), atol=3e-2, rtol=3e-2)

    print("KERNEL_OK")
</pallas_src>

<mosaic_0001>
module attributes {stable_mosaic.version = 11 : i64} {
  func.func @_cnn_kernel(%arg0: i32, %arg1: memref<8x8x32xbf16, #tpu.memory_space<vmem>>, %arg2: memref<3x32x128xbf16, #tpu.memory_space<vmem>>, %arg3: memref<1x128xf32, #tpu.memory_space<vmem>>, %arg4: memref<128x128xbf16, #tpu.memory_space<vmem>>, %arg5: memref<1x128xf32, #tpu.memory_space<vmem>>, %arg6: memref<128x128xbf16, #tpu.memory_space<vmem>>, %arg7: memref<1x128xf32, #tpu.memory_space<vmem>>, %arg8: memref<8x128xf32, #tpu.memory_space<vmem>>, %arg9: memref<8x10x32xbf16, #tpu.memory_space<vmem>>) attributes {dimension_semantics = [#tpu.dimension_semantics<parallel>], iteration_bounds = array<i64: 1>, scalar_prefetch = 0 : i64, scratch_operands = 1 : i64, tpu.core_type = #tpu.core_type<tc>, window_params = [{transform_indices = @transform_0, window_bounds = array<i64: 8, 8, 32>}, {pipeline_mode = #tpu.pipeline_mode<synchronous>, transform_indices = @transform_1, window_bounds = array<i64: 3, 32, 128>}, {pipeline_mode = #tpu.pipeline_mode<synchronous>, transform_indices = @transform_2, window_bounds = array<i64: 1, 128>}, {pipeline_mode = #tpu.pipeline_mode<synchronous>, transform_indices = @transform_3, window_bounds = array<i64: 128, 128>}, {pipeline_mode = #tpu.pipeline_mode<synchronous>, transform_indices = @transform_4, window_bounds = array<i64: 1, 128>}, {pipeline_mode = #tpu.pipeline_mode<synchronous>, transform_indices = @transform_5, window_bounds = array<i64: 128, 128>}, {pipeline_mode = #tpu.pipeline_mode<synchronous>, transform_indices = @transform_6, window_bounds = array<i64: 1, 128>}, {transform_indices = @transform_7, window_bounds = array<i64: 8, 128>}]} {
    %cst = arith.constant 0.000000e+00 : bf16
    %0 = vector.broadcast %cst : bf16 to vector<8x10x32xbf16>
    %c0 = arith.constant 0 : index
    %c0_0 = arith.constant 0 : index
    %c0_1 = arith.constant 0 : index
    %1 = vector.load %arg9[%c0, %c0_0, %c0_1] : memref<8x10x32xbf16, #tpu.memory_space<vmem>>, vector<8x10x32xbf16>
    tpu.vector_store %arg9[%c0, %c0_0, %c0_1], %0 {strides = array<i32>} : memref<8x10x32xbf16, #tpu.memory_space<vmem>>, vector<8x10x32xbf16>,
    %c0_2 = arith.constant 0 : index
    %c0_3 = arith.constant 0 : index
    %c0_4 = arith.constant 0 : index
    %2 = vector.load %arg1[%c0_2, %c0_3, %c0_4] : memref<8x8x32xbf16, #tpu.memory_space<vmem>>, vector<8x8x32xbf16>
    %c0_5 = arith.constant 0 : index
    %c1 = arith.constant 1 : index
    %c0_6 = arith.constant 0 : index
    %3 = vector.load %arg9[%c0_5, %c1, %c0_6] : memref<8x10x32xbf16, #tpu.memory_space<vmem>>, vector<8x8x32xbf16>
    tpu.vector_store %arg9[%c0_5, %c1, %c0_6], %2 {strides = array<i32>} : memref<8x10x32xbf16, #tpu.memory_space<vmem>>, vector<8x8x32xbf16>,
    %cst_7 = arith.constant 0xFF800000 : f32
    %4 = vector.broadcast %cst_7 : f32 to vector<8x128xf32>
    %cst_8 = arith.constant 0.000000e+00 : f32
    %5 = vector.broadcast %cst_8 : f32 to vector<64x128xf32>
    %c0_9 = arith.constant 0 : index
    %c0_10 = arith.constant 0 : index
    %c0_11 = arith.constant 0 : index
    %6 = vector.load %arg9[%c0_9, %c0_10, %c0_11] : memref<8x10x32xbf16, #tpu.memory_space<vmem>>, vector<8x8x32xbf16>
    %7 = vector.shape_cast %6 : vector<8x8x32xbf16> to vector<64x32xbf16>
    %c0_12 = arith.constant 0 : index
    %c0_13 = arith.constant 0 : index
    %c0_14 = arith.constant 0 : index
    %8 = vector.load %arg2[%c0_12, %c0_13, %c0_14] : memref<3x32x128xbf16, #tpu.memory_space<vmem>>, vector<1x32x128xbf16>
    %9 = vector.shape_cast %8 : vector<1x32x128xbf16> to vector<32x128xbf16>
    %cst_15 = arith.constant dense<0.000000e+00> : vector<64x128xf32>
    %10 = tpu.matmul %7, %9, %cst_15 {dimension_numbers = #tpu.dot_dimension_numbers<[1], [0], [0], [1], [0, 0, 1, 1], [], []>} : vector<64x32xbf16>, vector<32x128xbf16>, vector<64x128xf32> -> vector<64x128xf32>
    %11 = arith.addf %5, %10 : vector<64x128xf32>
    %c0_16 = arith.constant 0 : index
    %c1_17 = arith.constant 1 : index
    %c0_18 = arith.constant 0 : index
    %12 = vector.load %arg9[%c0_16, %c1_17, %c0_18] : memref<8x10x32xbf16, #tpu.memory_space<vmem>>, vector<8x8x32xbf16>
    %13 = vector.shape_cast %12 : vector<8x8x32xbf16> to vector<64x32xbf16>
    %c1_19 = arith.constant 1 : index
    %c0_20 = arith.constant 0 : index
    %c0_21 = arith.constant 0 : index
    %14 = vector.load %arg2[%c1_19, %c0_20, %c0_21] : memref<3x32x128xbf16, #tpu.memory_space<vmem>>, vector<1x32x128xbf16>
    %15 = vector.shape_cast %14 : vector<1x32x128xbf16> to vector<32x128xbf16>
    %cst_22 = arith.constant dense<0.000000e+00> : vector<64x128xf32>
    %16 = tpu.matmul %13, %15, %cst_22 {dimension_numbers = #tpu.dot_dimension_numbers<[1], [0], [0], [1], [0, 0, 1, 1], [], []>} : vector<64x32xbf16>, vector<32x128xbf16>, vector<64x128xf32> -> vector<64x128xf32>
    %17 = arith.addf %11, %16 : vector<64x128xf32>
    %c0_23 = arith.constant 0 : index
    %c2 = arith.constant 2 : index
    %c0_24 = arith.constant 0 : index
    %18 = vector.load %arg9[%c0_23, %c2, %c0_24] : memref<8x10x32xbf16, #tpu.memory_space<vmem>>, vector<8x8x32xbf16>
    %19 = vector.shape_cast %18 : vector<8x8x32xbf16> to vector<64x32xbf16>
    %c2_25 = arith.constant 2 : index
    %c0_26 = arith.constant 0 : index
    %c0_27 = arith.constant 0 : index
    %20 = vector.load %arg2[%c2_25, %c0_26, %c0_27] : memref<3x32x128xbf16, #tpu.memory_space<vmem>>, vector<1x32x128xbf16>
    %21 = vector.shape_cast %20 : vector<1x32x128xbf16> to vector<32x128xbf16>
    %cst_28 = arith.constant dense<0.000000e+00> : vector<64x128xf32>
    %22 = tpu.matmul %19, %21, %cst_28 {dimension_numbers = #tpu.dot_dimension_numbers<[1], [0], [0], [1], [0, 0, 1, 1], [], []>} : vector<64x32xbf16>, vector<32x128xbf16>, vector<64x128xf32> -> vector<64x128xf32>
    %23 = arith.addf %17, %22 : vector<64x128xf32>
    %24 = vector.shape_cast %23 : vector<64x128xf32> to vector<8x8x128xf32>
    %cst_29 = arith.constant dense<0xFF800000> : vector<8x128xf32>
    %25 = vector.multi_reduction <maximumf>, %24, %cst_29 [1] : vector<8x8x128xf32> to vector<8x128xf32>
    %26 = arith.maximumf %4, %25 : vector<8x128xf32>
    %c0_30 = arith.constant 0 : index
    %c0_31 = arith.constant 0 : index
    %27 = vector.load %arg3[%c0_30, %c0_31] : memref<1x128xf32, #tpu.memory_space<vmem>>, vector<1x128xf32>
    %28 = vector.broadcast %27 : vector<1x128xf32> to vector<8x128xf32>
    %29 = arith.addf %26, %28 : vector<8x128xf32>
    %30 = arith.truncf %29 : vector<8x128xf32> to vector<8x128xbf16>
    %c0_32 = arith.constant 0 : index
    %c0_33 = arith.constant 0 : index
    %31 = vector.load %arg4[%c0_32, %c0_33] : memref<128x128xbf16, #tpu.memory_space<vmem>>, vector<128x128xbf16>
    %cst_34 = arith.constant dense<0.000000e+00> : vector<8x128xf32>
    %32 = tpu.matmul %30, %31, %cst_34 {dimension_numbers = #tpu.dot_dimension_numbers<[1], [0], [0], [1], [0, 0, 1, 1], [], []>} : vector<8x128xbf16>, vector<128x128xbf16>, vector<8x128xf32> -> vector<8x128xf32>
    %c0_35 = arith.constant 0 : index
    %c0_36 = arith.constant 0 : index
    %33 = vector.load %arg5[%c0_35, %c0_36] : memref<1x128xf32, #tpu.memory_space<vmem>>, vector<1x128xf32>
    %34 = vector.broadcast %33 : vector<1x128xf32> to vector<8x128xf32>
    %35 = arith.addf %32, %34 : vector<8x128xf32>
    %36 = arith.truncf %35 : vector<8x128xf32> to vector<8x128xbf16>
    %c0_37 = arith.constant 0 : index
    %c0_38 = arith.constant 0 : index
    %37 = vector.load %arg6[%c0_37, %c0_38] : memref<128x128xbf16, #tpu.memory_space<vmem>>, vector<128x128xbf16>
    %cst_39 = arith.constant dense<0.000000e+00> : vector<8x128xf32>
    %38 = tpu.matmul %36, %37, %cst_39 {dimension_numbers = #tpu.dot_dimension_numbers<[1], [0], [0], [1], [0, 0, 1, 1], [], []>} : vector<8x128xbf16>, vector<128x128xbf16>, vector<8x128xf32> -> vector<8x128xf32>
    %c0_40 = arith.constant 0 : index
    %c0_41 = arith.constant 0 : index
    %39 = vector.load %arg7[%c0_40, %c0_41] : memref<1x128xf32, #tpu.memory_space<vmem>>, vector<1x128xf32>
    %40 = vector.broadcast %39 : vector<1x128xf32> to vector<8x128xf32>
    %41 = arith.addf %38, %40 : vector<8x128xf32>
    %c0_42 = arith.constant 0 : index
    %c0_43 = arith.constant 0 : index
    %42 = vector.load %arg8[%c0_42, %c0_43] : memref<8x128xf32, #tpu.memory_space<vmem>>, vector<8x128xf32>
    tpu.vector_store %arg8[%c0_42, %c0_43], %41 {strides = array<i32>} : memref<8x128xf32, #tpu.memory_space<vmem>>, vector<8x128xf32>,
    return
  }
  func.func @transform_0(%arg0: i32) -> (i32, i32, i32) {
    %c0_i32 = arith.constant 0 : i32
    %c0_i32_0 = arith.constant 0 : i32
    %c0_i32_1 = arith.constant 0 : i32
    return %arg0, %c0_i32, %c0_i32_0 : i32, i32, i32
  }
  func.func @transform_1(%arg0: i32) -> (i32, i32, i32) {
    %c0_i32 = arith.constant 0 : i32
    %c0_i32_0 = arith.constant 0 : i32
    %c0_i32_1 = arith.constant 0 : i32
    %c0_i32_2 = arith.constant 0 : i32
    return %c0_i32, %c0_i32_0, %c0_i32_1 : i32, i32, i32
  }
  func.func @transform_2(%arg0: i32) -> (i32, i32) {
    %c0_i32 = arith.constant 0 : i32
    %c0_i32_0 = arith.constant 0 : i32
    %c0_i32_1 = arith.constant 0 : i32
    return %c0_i32, %c0_i32_0 : i32, i32
  }
  func.func @transform_3(%arg0: i32) -> (i32, i32) {
    %c0_i32 = arith.constant 0 : i32
    %c0_i32_0 = arith.constant 0 : i32
    %c0_i32_1 = arith.constant 0 : i32
    return %c0_i32, %c0_i32_0 : i32, i32
  }
  func.func @transform_4(%arg0: i32) -> (i32, i32) {
    %c0_i32 = arith.constant 0 : i32
    %c0_i32_0 = arith.constant 0 : i32
    %c0_i32_1 = arith.constant 0 : i32
    return %c0_i32, %c0_i32_0 : i32, i32
  }
  func.func @transform_5(%arg0: i32) -> (i32, i32) {
    %c0_i32 = arith.constant 0 : i32
    %c0_i32_0 = arith.constant 0 : i32
    %c0_i32_1 = arith.constant 0 : i32
    return %c0_i32, %c0_i32_0 : i32, i32
  }
  func.func @transform_6(%arg0: i32) -> (i32, i32) {
    %c0_i32 = arith.constant 0 : i32
    %c0_i32_0 = arith.constant 0 : i32
    %c0_i32_1 = arith.constant 0 : i32
    return %c0_i32, %c0_i32_0 : i32, i32
  }
  func.func @transform_7(%arg0: i32) -> (i32, i32) {
    %c0_i32 = arith.constant 0 : i32
    %c0_i32_0 = arith.constant 0 : i32
    return %arg0, %c0_i32 : i32, i32
  }
}

</mosaic_0001>

<bundles_post_ra>
// kernel: tpu_custom_call.1
= control target key start
LH: loop header
LB: loop body
LE: loop exit
PB: predicated region body
PF: predicated region fallthrough
CT: control target
= control target key end

     0   :  { %12 = vsyncpa [#allocation4], 0  ;;  %s1809_s0 = inlined_call_operand.hbm [shape: bf16[8,8,32], index: 0, kind: input, shape index: {}]   ;;  %s1810_s1 = inlined_call_operand.hbm [shape: bf16[3,32,128], index: 1, kind: input, shape index: {}]   ;;  %s1811_s2 = inlined_call_operand.vmem [shape: f32[1,128], index: 2, kind: input, shape index: {}]   ;;  %s1812_s3 = inlined_call_operand.hbm [shape: bf16[128,128], index: 3, kind: input, shape index: {}]   ;;  %s1813_s4 = inlined_call_operand.vmem [shape: f32[1,128], index: 4, kind: input, shape index: {}]   ;;  %s1814_s5 = inlined_call_operand.hbm [shape: bf16[128,128], index: 5, kind: input, shape index: {}]   ;;  %s1815_s6 = inlined_call_operand.vmem [shape: f32[1,128], index: 6, kind: input, shape index: {}]   ;;  %s1816_s7 = inlined_call_operand.hbm [shape: f32[8,128], index: 7, kind: output, shape index: {}]  }
   0x1   :  { %13 = vsyncpa [#allocation7], 0 }
   0x2   :  { %14 = vsyncpa [#allocation10], 0 }
   0x3   :  { %15 = vsyncpa [#allocation5], 0  ;;  %s1456_s24 = smov [#allocation6]   ;;  %s1457_s26 = smov [#allocation3]  }
   0x4   :  { %s33_s25 = sshll.u32 %s1456_s24, 4  ;;  %s21_s27 = sshll.u32 %s1457_s26, 4  ;;  %s34_s25 = int_to_ptr.vmem [resolvable:$true] %s33_s25  ;;  %s1506_s27 = int_to_ptr.vmem [resolvable:$true] %s21_s27 }
   0x5   :  { %s1338_s30 = scalar_lea.hbm %s1810_s1, 768 }
   0x6   :  { %p1339_p0 = scmp.ne.s32.totalorder %s1810_s1, %s1338_s30  ;;  %p1342_p1 = scmp.lt.u32.totalorder %s1338_s30, %s1810_s1 }
   0x8   :  { %p1344_p2 = pnand %p1342_p1, %p1339_p0 }
   0xa   :  { %1347 = shalt.err (!%p1344_p2)
}
   0xb   :  { %s1348_s12 = scalar_lea.vmem %s34_s25, 768  ;;  %p1353_p4 = scmp.lt.s32.totalorder %s34_s25, %s34_s25 }
   0xc   :  { %p1349_p3 = scmp.ne.s32.totalorder %s34_s25, %s1348_s12  ;;  %p1354_p5 = scmp.lt.s32.totalorder %s1348_s12, %s1348_s12 }
   0xe   :  { %p1355_p6 = por %p1354_p5, %p1353_p4 }
  0x10   :  { %p1356_p7 = pnand %p1355_p6, %p1349_p3 }
  0x12   :  { %1359 = shalt.err (!%p1356_p7)
}
  0x13   :  { %s1458_s13 = smov 64   ;;  %s1459_s14 = smov 4  }
  0x14   :  { %39 = dma.hbm_to_vmem [thread:$0]  %s1810_s1, 768, %s34_s25, [#allocation7], %s1458_s13, %s1458_s13, %s1459_s14  }
  0x15   :  { %s1360_s19 = scalar_lea.hbm %s1809_s0, 512 }
  0x16   :  { %p1361_p8 = scmp.ne.s32.totalorder %s1809_s0, %s1360_s19  ;;  %p1364_p9 = scmp.lt.u32.totalorder %s1360_s19, %s1809_s0 }
  0x18   :  { %p1366_p10 = pnand %p1364_p9, %p1361_p8 }
  0x1a   :  { %1369 = shalt.err (!%p1366_p10)
}
  0x1b   :  { %s1370_s24 = scalar_lea.vmem %s1506_s27, 512  ;;  %p1375_p12 = scmp.lt.s32.totalorder %s1506_s27, %s1506_s27 }
  0x1c   :  { %p1371_p11 = scmp.ne.s32.totalorder %s1506_s27, %s1370_s24  ;;  %p1376_p13 = scmp.lt.s32.totalorder %s1370_s24, %s1370_s24 }
  0x1e   :  { %p1377_p0 = por %p1376_p13, %p1375_p12 }
  0x20   :  { %p1378_p1 = pnand %p1377_p0, %p1371_p11 }
  0x22   :  { %1381 = shalt.err (!%p1378_p1)
}
  0x23   :  { %27 = dma.hbm_to_vmem [thread:$0]  %s1809_s0, 512, %s1506_s27, [#allocation4], %s1458_s13, %s1458_s13, %s1459_s14  }
  0x24   :  { %s1460_s26 = smov [#allocation8]   ;;  %s1461_s29 = smov [#allocation9]  }
  0x25   :  { %s47_s28 = sshll.u32 %s1460_s26, 4  ;;  %s61_s30 = sshll.u32 %s1461_s29, 4  ;;  %s48_s28 = int_to_ptr.vmem [resolvable:$true] %s47_s28  ;;  %s1543_s30 = int_to_ptr.vmem [resolvable:$true] %s61_s30 }
  0x26   :  { %s1382_s10 = scalar_lea.hbm %s1812_s3, 1024 }
  0x27   :  { %p1383_p2 = scmp.ne.s32.totalorder %s1812_s3, %s1382_s10  ;;  %p1386_p3 = scmp.lt.u32.totalorder %s1382_s10, %s1812_s3 }
  0x29   :  { %p1388_p4 = pnand %p1386_p3, %p1383_p2 }
  0x2b   :  { %1391 = shalt.err (!%p1388_p4)
}
  0x2c   :  { %s1392_s0 = scalar_lea.vmem %s48_s28, 1024  ;;  %p1397_p6 = scmp.lt.s32.totalorder %s48_s28, %s48_s28 }
  0x2d   :  { %p1393_p5 = scmp.ne.s32.totalorder %s48_s28, %s1392_s0  ;;  %p1398_p7 = scmp.lt.s32.totalorder %s1392_s0, %s1392_s0 }
  0x2f   :  { %p1399_p8 = por %p1398_p7, %p1397_p6 }
  0x31   :  { %p1400_p9 = pnand %p1399_p8, %p1393_p5 }
  0x33   :  { %1403 = shalt.err (!%p1400_p9)
}
  0x34   :  { %53 = dma.hbm_to_vmem [thread:$0]  %s1812_s3, 1024, %s48_s28, [#allocation7], %s1458_s13, %s1458_s13, %s1459_s14  }
  0x35   :  { %s1404_s20 = scalar_lea.hbm %s1814_s5, 1024 }
  0x36   :  { %p1405_p10 = scmp.ne.s32.totalorder %s1814_s5, %s1404_s20  ;;  %p1408_p11 = scmp.lt.u32.totalorder %s1404_s20, %s1814_s5 }
  0x38   :  { %p1410_p12 = pnand %p1408_p11, %p1405_p10 }
  0x3a   :  { %1413 = shalt.err (!%p1410_p12)
}
  0x3b   :  { %s1414_s1 = scalar_lea.vmem %s1543_s30, 1024  ;;  %p1419_p0 = scmp.lt.s32.totalorder %s1543_s30, %s1543_s30 }
  0x3c   :  { %p1415_p13 = scmp.ne.s32.totalorder %s1543_s30, %s1414_s1  ;;  %p1420_p1 = scmp.lt.s32.totalorder %s1414_s1, %s1414_s1 }
  0x3e   :  { %p1421_p2 = por %p1420_p1, %p1419_p0 }
  0x40   :  { %p1422_p3 = pnand %p1421_p2, %p1415_p13 }
  0x42   :  { %1425 = shalt.err (!%p1422_p3)
}
  0x43   :  { %67 = dma.hbm_to_vmem [thread:$0]  %s1814_s5, 1024, %s1543_s30, [#allocation10], %s1458_s13, %s1458_s13, %s1459_s14  }
  0x44   :  { %1448 = dma.done.wait [#allocation4], 512  }
  0x45   :  { %1449 = vsyncadd [#allocation4], 4294966784 }
  0x46   :  { %1450 = dma.done.wait [#allocation7], 1792  }
  0x47   :  { %1451 = vsyncadd [#allocation7], 4294965504 }
  0x48   :  { %1452 = dma.done.wait [#allocation10], 1024  }
  0x49   :  { %1453 = vsyncadd [#allocation10], 4294966272  ;;  %vm83_vm0 = vcmask 257024   ;;  %vm85_vm1 = vcmask 253952   ;;  %v1462_v0 = vmov 0   ;;  %v1313_v1 = vld [vmem:[#allocation6 + $0x10] sm:$0xff]  }
  0x4a   :  { %84 = vst.msk [vmem:[#allocation2] sm:$0xf] %vm83_vm0, %v1462_v0  ;;  %87 = vst.msk [vmem:[#allocation2 + $0x8] sm:$0xf] %vm83_vm0, %v1462_v0  ;;  %vm190_vm2 = vsmask.f32 7938  ;;  %1211 = vmatprep.subr.bf16.mxu0 %v1313_v1 }
  0x4b   :  { %86 = vst.msk [vmem:[#allocation2 + $0x4] sm:$0x1] %vm85_vm1, %v1462_v0  ;;  %88 = vst.msk [vmem:[#allocation2 + $0xc] sm:$0x1] %vm85_vm1, %v1462_v0  ;;  %v1314_v2 = vld [vmem:[#allocation6 + $0x18] sm:$0xff]   ;;  %1212 = vmatpush3.bf16.msra.mxu0 %v1313_v1  ;;  %v1606_v16 = vld [vmem:[#allocation6] sm:$0xff]  }
  0x4c   :  { %89 = vst.msk [vmem:[#allocation2 + $0x10] sm:$0xf] %vm83_vm0, %v1462_v0  ;;  %91 = vst.msk [vmem:[#allocation2 + $0x18] sm:$0xf] %vm83_vm0, %v1462_v0  ;;  %v101_v3 = vld [vmem:[#allocation3] sm:$0xf]  ;;  %1213 = vmatprep.subr.bf16.mxu0 %v1314_v2 }
  0x4d   :  { %90 = vst.msk [vmem:[#allocation2 + $0x14] sm:$0x1] %vm85_vm1, %v1462_v0  ;;  %92 = vst.msk [vmem:[#allocation2 + $0x1c] sm:$0x1] %vm85_vm1, %v1462_v0  ;;  %v102_v4 = vld [vmem:[#allocation3 + $0x4] sm:$0xf] }
  0x4e   :  { %93 = vst.msk [vmem:[#allocation2 + $0x20] sm:$0xf] %vm83_vm0, %v1462_v0  ;;  %95 = vst.msk [vmem:[#allocation2 + $0x28] sm:$0xf] %vm83_vm0, %v1462_v0  ;;  %vm196_vm3 = vsmask.f32 256 }
  0x4f   :  { %94 = vst.msk [vmem:[#allocation2 + $0x24] sm:$0x1] %vm85_vm1, %v1462_v0  ;;  %96 = vst.msk [vmem:[#allocation2 + $0x2c] sm:$0x1] %vm85_vm1, %v1462_v0  ;;  %v110_v5 = vshrl.u32 %v101_v3, 16  ;;  %v113_v6 = vshll.u32 %v101_v3, 16  ;;  %1214 = vmatpush3.bf16.msra.mxu0 %v1314_v2 }
  0x50   :  { %97 = vst.msk [vmem:[#allocation2 + $0x30] sm:$0xf] %vm83_vm0, %v1462_v0  ;;  %99 = vst.msk [vmem:[#allocation2 + $0x38] sm:$0xf] %vm83_vm0, %v1462_v0  ;;  %v118_v7 = vshrl.u32 %v102_v4, 16  ;;  %v121_v8 = vshll.u32 %v102_v4, 16  ;;  %1223 = vmatprep.subr.bf16.mxu0 %v1606_v16 }
  0x51   :  { %98 = vst.msk [vmem:[#allocation2 + $0x34] sm:$0x1] %vm85_vm1, %v1462_v0  ;;  %100 = vst.msk [vmem:[#allocation2 + $0x3c] sm:$0x1] %vm85_vm1, %v1462_v0  ;;  %v192_v10 = vld [vmem:[#allocation2] sm:$0xf] }
  0x52   :  { %vm1597_vm4 = vmand %vm83_vm0, %vm190_vm2  ;;  %v198_v11 = vld [vmem:[#allocation2 + $0x4] sm:$0x1]  ;;  %v201_v12 = vld [vmem:[#allocation2 + $0x8] sm:$0xf]  ;;  %v112_v13 = vrot.slane %v110_v5, 7  ;;  %v120_v14 = vrot.slane %v118_v7, 7 }
  0x53   :  { %vm1602_vm5 = vmand %vm85_vm1, %vm196_vm3  ;;  %v204_v17 = vld [vmem:[#allocation2 + $0xc] sm:$0x1]  ;;  %v103_v18 = vld [vmem:[#allocation3 + $0x8] sm:$0xf]  ;;  %vm263_vm6 = vsmask.f32 3328 }
  0x54   :  { %v104_v19 = vld [vmem:[#allocation3 + $0xc] sm:$0xf]  ;;  %v115_v20 = vor.u32 %v113_v6, %v112_v13  ;;  %v116_v21 = vrot.slane %v112_v13, 4  ;;  %v123_v22 = vor.u32 %v121_v8, %v120_v14  ;;  %v124_v23 = vrot.slane %v120_v14, 4  ;;  %v207_v32 = vld [vmem:[#allocation2 + $0x10] sm:$0xf] }
  0x55   :  { %v126_v24 = vshrl.u32 %v103_v18, 16  ;;  %v129_v25 = vshll.u32 %v103_v18, 16  ;;  %v134_v26 = vshrl.u32 %v104_v19, 16  ;;  %v137_v27 = vshll.u32 %v104_v19, 16  ;;  %v210_v33 = vld [vmem:[#allocation2 + $0x14] sm:$0x1] }
  0x56   :  { %v193_v28 = vsel %vm1597_vm4, %v115_v20, %v192_v10  ;;  %v199_v29 = vsel %vm1602_vm5, %v116_v21, %v198_v11  ;;  %v202_v30 = vsel %vm1597_vm4, %v123_v22, %v201_v12  ;;  %v205_v31 = vsel %vm1602_vm5, %v124_v23, %v204_v17  ;;  %v105_v34 = vld [vmem:[#allocation3 + $0x10] sm:$0xf]  ;;  %v106_v35 = vld [vmem:[#allocation3 + $0x14] sm:$0xf]  ;;  %v213_v38 = vld [vmem:[#allocation2 + $0x18] sm:$0xf] }
  0x57   :  { %194 = vst [vmem:[#allocation2] sm:$0xf] %v193_v28  ;;  %200 = vst [vmem:[#allocation2 + $0x4] sm:$0x1] %v199_v29  ;;  %v128_v36 = vrot.slane %v126_v24, 7  ;;  %v136_v37 = vrot.slane %v134_v26, 7 }
  0x58   :  { %203 = vst [vmem:[#allocation2 + $0x8] sm:$0xf] %v202_v30  ;;  %206 = vst [vmem:[#allocation2 + $0xc] sm:$0x1] %v205_v31  ;;  %v142_v39 = vshrl.u32 %v105_v34, 16  ;;  %v145_v41 = vshll.u32 %v105_v34, 16 }
  0x59   :  { %v216_v40 = vld [vmem:[#allocation2 + $0x1c] sm:$0x1]  ;;  %v150_v42 = vshrl.u32 %v106_v35, 16  ;;  %v153_v43 = vshll.u32 %v106_v35, 16  ;;  %v131_v44 = vor.u32 %v129_v25, %v128_v36  ;;  %v132_v45 = vrot.slane %v128_v36, 4  ;;  %s1465_s29 = smov [#allocation11]  }
  0x5a   :  { %v139_v46 = vor.u32 %v137_v27, %v136_v37  ;;  %v140_v47 = vrot.slane %v136_v37, 4  ;;  %vm264_vm7 = vsmask.f32 7440  ;;  %v144_v48 = vrot.slane %v142_v39, 7  ;;  %v219_v50 = vld [vmem:[#allocation2 + $0x20] sm:$0xf] }
  0x5b   :  { %v152_v49 = vrot.slane %v150_v42, 7  ;;  %v208_v51 = vsel %vm1597_vm4, %v131_v44, %v207_v32  ;;  %v211_v52 = vsel %vm1602_vm5, %v132_v45, %v210_v33  ;;  %v222_v55 = vld [vmem:[#allocation2 + $0x24] sm:$0x1]  ;;  %v225_v56 = vld [vmem:[#allocation2 + $0x28] sm:$0xf]  ;;  %vm407_vm8 = vcmask 261120   ;;  %vm1663_vm9 = vmor %vm263_vm6, %vm264_vm7 }
  0x5c   :  { %v214_v53 = vsel %vm1597_vm4, %v139_v46, %v213_v38  ;;  %v217_v54 = vsel %vm1602_vm5, %v140_v47, %v216_v40  ;;  %v228_v57 = vld [vmem:[#allocation2 + $0x2c] sm:$0x1]  ;;  %209 = vst [vmem:[#allocation2 + $0x10] sm:$0xf] %v208_v51  ;;  %212 = vst [vmem:[#allocation2 + $0x14] sm:$0x1] %v211_v52  ;;  %v147_v58 = vor.u32 %v145_v41, %v144_v48 }
  0x5d   :  { %215 = vst [vmem:[#allocation2 + $0x18] sm:$0xf] %v214_v53  ;;  %218 = vst [vmem:[#allocation2 + $0x1c] sm:$0x1] %v217_v54  ;;  %v148_v59 = vrot.slane %v144_v48, 4  ;;  %v155_v60 = vor.u32 %v153_v43, %v152_v49  ;;  %v156_v61 = vrot.slane %v152_v49, 4 }
  0x5e   :  { %v1625_v62 = vld [vmem:[#allocation3 + $0x18] sm:$0xf]  ;;  %v1627_v63 = vld [vmem:[#allocation3 + $0x1c] sm:$0xf]  ;;  %v1629_v0 = vld [vmem:[#allocation2] sm:$0xf]  ;;  %v220_v3 = vsel %vm1597_vm4, %v147_v58, %v219_v50 }
  0x5f   :  { %v1631_v1 = vld [vmem:[#allocation2 + $0x8] sm:$0xf]  ;;  %v1633_v2 = vld [vmem:[#allocation2 + $0x4] sm:$0x1]  ;;  %v223_v4 = vsel %vm1602_vm5, %v148_v59, %v222_v55  ;;  %v226_v5 = vsel %vm1597_vm4, %v155_v60, %v225_v56  ;;  %v229_v6 = vsel %vm1602_vm5, %v156_v61, %v228_v57  ;;  %v1643_v7 = vld [vmem:[#allocation2 + $0xc] sm:$0x1] }
  0x60   :  { %v267_v8 = vshrl.u32 %v1629_v0, 16  ;;  %v270_v10 = vshll.u32 %v1629_v0, 16  ;;  %v276_v11 = vshll.u32 %v1633_v2, 16  ;;  %v281_v12 = vshrl.u32 %v1631_v1, 16  ;;  %221 = vst [vmem:[#allocation2 + $0x20] sm:$0xf] %v220_v3 }
  0x61   :  { %224 = vst [vmem:[#allocation2 + $0x24] sm:$0x1] %v223_v4  ;;  %227 = vst [vmem:[#allocation2 + $0x28] sm:$0xf] %v226_v5  ;;  %v284_v13 = vshll.u32 %v1631_v1, 16  ;;  %v290_v14 = vshll.u32 %v1643_v7, 16 }
  0x62   :  { %230 = vst [vmem:[#allocation2 + $0x2c] sm:$0x1] %v229_v6  ;;  %v158_v17 = vshrl.u32 %v1625_v62, 16  ;;  %v161_v18 = vshll.u32 %v1625_v62, 16  ;;  %v269_v19 = vrot.slane %v267_v8, 4  ;;  %v272_v20 = vrot.slane %v270_v10, 5 }
  0x63   :  { %v283_v21 = vrot.slane %v281_v12, 4  ;;  %v166_v22 = vshrl.u32 %v1627_v63, 16  ;;  %v278_v23 = vrot.slane %v276_v11, 5  ;;  %v286_v24 = vrot.slane %v284_v13, 5  ;;  %v1655_v28 = vld [vmem:[#allocation2 + $0x10] sm:$0xf] }
  0x64   :  { %v292_v25 = vrot.slane %v290_v14, 5  ;;  %v169_v26 = vshll.u32 %v1627_v63, 16  ;;  %v273_v27 = vor.u32 %v272_v20, %v269_v19  ;;  %v1657_v29 = vld [vmem:[#allocation2 + $0x18] sm:$0xf]  ;;  %v1659_v30 = vld [vmem:[#allocation2 + $0x14] sm:$0x1] }
  0x65   :  { %v287_v32 = vor.u32 %v286_v24, %v283_v21  ;;  %v1667_v33 = vld [vmem:[#allocation2 + $0x1c] sm:$0x1]  ;;  %v295_v34 = vshrl.u32 %v1655_v28, 16  ;;  %v298_v35 = vshll.u32 %v1655_v28, 16  ;;  %v304_v36 = vshll.u32 %v1659_v30, 16  ;;  %s1107_s30 = sshll.u32 %s1465_s29, 4  ;;  %s1108_s30 = int_to_ptr.vmem [resolvable:$true] %s1107_s30 }
  0x66   :  { %v274_v37 = vrot.slane %v273_v27, 4  ;;  %v309_v38 = vshrl.u32 %v1657_v29, 16  ;;  %v312_v39 = vshll.u32 %v1657_v29, 16  ;;  %v318_v40 = vshll.u32 %v1667_v33, 16  ;;  %v231_v5 = vld [vmem:[#allocation2 + $0x30] sm:$0xf]  ;;  %p1431_p5 = scmp.lt.s32.totalorder %s1108_s30, %s1108_s30 }
  0x67   :  { %v288_v41 = vrot.slane %v287_v32, 4  ;;  %v297_v42 = vrot.slane %v295_v34, 4  ;;  %v300_v43 = vrot.slane %v298_v35, 5  ;;  %v1675_v44 = vld [vmem:[#allocation2 + $0x20] sm:$0xf]  ;;  %v160_v45 = vrot.slane %v158_v17, 7 }
  0x68   :  { %v279_v46 = vsel %vm1663_vm9, %v274_v37, %v278_v23  ;;  %v311_v47 = vrot.slane %v309_v38, 4  ;;  %v314_v48 = vrot.slane %v312_v39, 5  ;;  %v1679_v49 = vld [vmem:[#allocation2 + $0x28] sm:$0xf]  ;;  %v168_v50 = vrot.slane %v166_v22, 7 }
  0x69   :  { %v293_v51 = vsel %vm1663_vm9, %v288_v41, %v292_v25  ;;  %v301_v52 = vor.u32 %v300_v43, %v297_v42  ;;  %v306_v53 = vrot.slane %v304_v36, 5  ;;  %v320_v54 = vrot.slane %v318_v40, 5  ;;  %v1683_v55 = vld [vmem:[#allocation2 + $0x24] sm:$0x1]  ;;  %v1685_v56 = vld [vmem:[#allocation2 + $0x2c] sm:$0x1] }
  0x6a   :  { %v1118_v57 = vcombine.low %v279_v46, %v293_v51  ;;  %v315_v58 = vor.u32 %v314_v48, %v311_v47  ;;  %v323_v59 = vshrl.u32 %v1675_v44, 16  ;;  %v326_v60 = vshll.u32 %v1675_v44, 16  ;;  %v234_v12 = vld [vmem:[#allocation2 + $0x34] sm:$0x1]  ;;  %v237_v13 = vld [vmem:[#allocation2 + $0x38] sm:$0xf] }
  0x6b   :  { %v302_v61 = vrot.slane %v301_v52, 4  ;;  %v332_v63 = vshll.u32 %v1683_v55, 16  ;;  %v337_v3 = vshrl.u32 %v1679_v49, 16  ;;  %v340_v4 = vshll.u32 %v1679_v49, 16  ;;  %v240_v21 = vld [vmem:[#allocation2 + $0x3c] sm:$0x1] }
  0x6c   :  { %1215 = vmatprep.mubr.msk.bf16.mxu0 %vm407_vm8, %v1118_v57  ;;  %v316_v6 = vrot.slane %v315_v58, 4  ;;  %v325_v8 = vrot.slane %v323_v59, 4  ;;  %v328_v10 = vrot.slane %v326_v60, 5  ;;  %v346_v11 = vshll.u32 %v1685_v56, 16  ;;  %v1316_v34 = vld [vmem:[#allocation6 + $0x8] sm:$0xff]   ;;  %v1317_v43 = vld [vmem:[#allocation6 + $0x20] sm:$0xff]  }
  0x6d   :  { %v307_v14 = vsel %vm1663_vm9, %v302_v61, %v306_v53  ;;  %v334_v17 = vrot.slane %v332_v63, 5  ;;  %v339_v19 = vrot.slane %v337_v3, 4  ;;  %v342_v20 = vrot.slane %v340_v4, 5 }
  0x6e   :  { %v321_v22 = vsel %vm1663_vm9, %v316_v6, %v320_v54  ;;  %v329_v23 = vor.u32 %v328_v10, %v325_v8  ;;  %v348_v24 = vrot.slane %v346_v11, 5  ;;  %v163_v25 = vor.u32 %v161_v18, %v160_v45 }
  0x6f   :  { %v1119_v27 = vcombine.low %v307_v14, %v321_v22  ;;  %v343_v32 = vor.u32 %v342_v20, %v339_v19  ;;  %v164_v35 = vrot.slane %v160_v45, 4  ;;  %v171_v36 = vor.u32 %v169_v26, %v168_v50  ;;  %v598_v22 = vld [vmem:[#allocation2 + $0x20] sm:$0xe] }
  0x70   :  { %v330_v37 = vrot.slane %v329_v23, 4  ;;  %v172_v38 = vrot.slane %v168_v50, 4  ;;  %v232_v39 = vsel %vm1597_vm4, %v163_v25, %v231_v5  ;;  %v1128_v10 = vcombine.low %v1629_v0, %v1631_v1  ;;  %v1320_v0 = vld [vmem:[#allocation6 + $0x28] sm:$0xff]  }
  0x71   :  { %1216 = vmatmul.mubr.msk.bf16.vlgmr.msra.gmra.mrb[0].mxu0 %vm407_vm8, %v1119_v27  ;;  %v344_v40 = vrot.slane %v343_v32, 4  ;;  %233 = vst [vmem:[#allocation2 + $0x30] sm:$0xf] %v232_v39  ;;  %v235_v41 = vsel %vm1602_vm5, %v164_v35, %v234_v12  ;;  %v238_v62 = vsel %vm1597_vm4, %v171_v36, %v237_v13  ;;  %v594_v12 = vld [vmem:[#allocation2] sm:$0xe]  ;;  %v1129_v14 = vcombine.low %v1655_v28, %v1657_v29 }
  0x72   :  { %1224 = vmatpush3.bf16.msra.mxu0 %v1606_v16  ;;  %v335_v18 = vsel %vm1663_vm9, %v330_v37, %v334_v17  ;;  %236 = vst [vmem:[#allocation2 + $0x34] sm:$0x1] %v235_v41  ;;  %239 = vst [vmem:[#allocation2 + $0x38] sm:$0xf] %v238_v62  ;;  %v241_v26 = vsel %vm1602_vm5, %v172_v38, %v240_v21  ;;  %v595_v13 = vld [vmem:[#allocation2 + $0x8] sm:$0xe]  ;;  %v1130_v17 = vcombine.low %v1675_v44, %v1679_v49 }
  0x73   :  { %v349_v42 = vsel %vm1663_vm9, %v344_v40, %v348_v24  ;;  %1225 = vmatprep.subr.bf16.mxu0 %v1316_v34  ;;  %242 = vst [vmem:[#allocation2 + $0x3c] sm:$0x1] %v241_v26  ;;  %vm618_vm10 = vcmask 1042432   ;;  %vm619_vm11 = vcmask 1046532   ;;  %v623_v31 = vrot.slane %v1633_v2, 5 }
  0x74   :  { %v1120_v45 = vcombine.low %v335_v18, %v349_v42  ;;  %v627_v19 = vrot.slane %v1643_v7, 5  ;;  %v1138_v1 = vrot.slane %v594_v12, 9  ;;  %v1139_v20 = vrot.slane %v595_v13, 9  ;;  %vm1735_vm12 = vmor %vm618_vm10, %vm619_vm11  ;;  %v596_v28 = vld [vmem:[#allocation2 + $0x10] sm:$0xe] }
  0x75   :  { %v597_v29 = vld [vmem:[#allocation2 + $0x18] sm:$0xe]  ;;  %v599_v44 = vld [vmem:[#allocation2 + $0x28] sm:$0xe]  ;;  %v631_v49 = vrot.slane %v1659_v30, 5  ;;  %v635_v23 = vrot.slane %v1667_v33, 5 }
  0x76   :  { %1219 = vmatprep.mubr.msk.bf16.mxu0 %vm407_vm8, %v1120_v45  ;;  %1226 = vmatpush3.bf16.msra.mxu0 %v1316_v34  ;;  %v624_v2 = vsel %vm1735_vm12, %v1138_v1, %v623_v31  ;;  %v628_v7 = vsel %vm1735_vm12, %v1139_v20, %v627_v19  ;;  %v1140_v25 = vrot.slane %v596_v28, 9  ;;  %v1141_v27 = vrot.slane %v597_v29, 9  ;;  %v1156_v21 = vld [vmem:[%s1811_s2] ss:$0 sm:$0xff] }
  0x77   :  { %1235 = vmatprep.subr.bf16.mxu0 %v1317_v43  ;;  %v1142_v32 = vrot.slane %v598_v22, 9  ;;  %v1146_v34 = vcombine.low %v624_v2, %v628_v7  ;;  %v639_v35 = vrot.slane %v1683_v55, 5  ;;  %v1143_v36 = vrot.slane %v599_v44, 9 }
  0x78   :  { %v249_v9 = vld [vmem:[#allocation2 + $0x30] sm:$0xf]  ;;  %v643_v37 = vrot.slane %v1685_v56, 5  ;;  %v632_v30 = vsel %vm1735_vm12, %v1140_v25, %v631_v49  ;;  %v636_v33 = vsel %vm1735_vm12, %v1141_v27, %v635_v23  ;;  %vm1464_vm13 = vmmov 0  }
  0x79   :  { %v250_v16 = vld [vmem:[#allocation2 + $0x38] sm:$0xf]  ;;  %v1715_v46 = vld [vmem:[#allocation2 + $0x34] sm:$0x1]  ;;  %v351_v47 = vshrl.u32 %v249_v9, 16  ;;  %v354_v48 = vshll.u32 %v249_v9, 16  ;;  %v640_v38 = vsel %vm1735_vm12, %v1142_v32, %v639_v35  ;;  %v1147_v41 = vcombine.low %v632_v30, %v636_v33 }
  0x7a   :  { %v1717_v50 = vld [vmem:[#allocation2 + $0x3c] sm:$0x1]  ;;  %v360_v15 = vshll.u32 %v1715_v46, 16  ;;  %v365_v51 = vshrl.u32 %v250_v16, 16  ;;  %v368_v52 = vshll.u32 %v250_v16, 16  ;;  %v1131_v24 = vcombine.low %v249_v9, %v250_v16  ;;  %v1322_v16 = vld [vmem:[#allocation8] sm:$0xff]  }
  0x7b   :  { %v353_v53 = vrot.slane %v351_v47, 4  ;;  %v356_v54 = vrot.slane %v354_v48, 5  ;;  %v374_v57 = vshll.u32 %v1717_v50, 16  ;;  %v644_v39 = vsel %vm1735_vm12, %v1143_v36, %v643_v37  ;;  %v600_v55 = vld [vmem:[#allocation2 + $0x30] sm:$0xe]  ;;  %v1324_v48 = vld [vmem:[#allocation8 + $0x10] sm:$0xff]  }
  0x7c   :  { %v367_v58 = vrot.slane %v365_v51, 4  ;;  %v370_v59 = vrot.slane %v368_v52, 5  ;;  %v362_v61 = vrot.slane %v360_v15, 5  ;;  %v601_v40 = vld [vmem:[#allocation2 + $0x38] sm:$0xe]  ;;  %v1148_v56 = vcombine.low %v640_v38, %v644_v39  ;;  %v1326_v15 = vld [vmem:[#allocation8 + $0x20] sm:$0xff]  }
  0x7d   :  { %v357_v60 = vor.u32 %v356_v54, %v353_v53  ;;  %v376_v63 = vrot.slane %v374_v57, 5  ;;  %v1144_v62 = vrot.slane %v600_v55, 9  ;;  %v647_v18 = vrot.slane %v1715_v46, 5  ;;  %v1323_v46 = vld [vmem:[#allocation8 + $0x8] sm:$0xff]   ;;  %v1328_v52 = vld [vmem:[#allocation8 + $0x30] sm:$0xff]   ;;  %v1329_v53 = vld [vmem:[#allocation8 + $0x38] sm:$0xff]  }
  0x7e   :  { %v371_v3 = vor.u32 %v370_v59, %v367_v58  ;;  %v1145_v26 = vrot.slane %v601_v40, 9  ;;  %v651_v42 = vrot.slane %v1717_v50, 5  ;;  %v1463_v47 = vmov 0.0   ;;  %v1325_v50 = vld [vmem:[#allocation8 + $0x18] sm:$0xff]   ;;  %v1327_v51 = vld [vmem:[#allocation8 + $0x28] sm:$0xff]  }
  0x7f   :  { %v358_v4 = vrot.slane %v357_v60, 4  ;;  %1247 = vmatprep.subr.bf16.mxu1 %v1463_v47  ;;  %1263 = vmatprep.mubr.msk.bf16.mxu1 %vm1464_vm13, %v1463_v47  ;;  %vm878_vm14 = vcmask 1041409   ;;  %vm881_vm15 = vcmask 1042434   ;;  %vm884_vm0 = vcmask 1043459  }
  0x80   :  { %v372_v5 = vrot.slane %v371_v3, 4  ;;  %v652_v45 = vsel %vm1735_vm12, %v1145_v26, %v651_v42  ;;  %1248 = vmatpush3.bf16.msra.mxu1 %v1322_v16  ;;  %vm887_vm1 = vcmask 1044484   ;;  %vm890_vm2 = vcmask 1045509  }
  0x81   :  { %v363_v6 = vsel %vm1663_vm9, %v358_v4, %v362_v61  ;;  %1249 = vmatprep.subr.bf16.mxu1 %v1463_v47  ;;  %vm893_vm3 = vcmask 1046534   ;;  %vm896_vm4 = vcmask 1047559  }
  0x82   :  { %v377_v8 = vsel %vm1663_vm9, %v372_v5, %v376_v63 }
  0x83   :  { %v1121_v11 = vcombine.low %v363_v6, %v377_v8 }
  0x84   :  { %1250 = vmatpush3.bf16.msra.mxu1 %v1323_v46 }
  0x85   :  { %1220 = vmatmul.mubr.msk.bf16.gmra.mrb[4].mxu0 %vm407_vm8, %v1121_v11  ;;  %1251 = vmatprep.subr.bf16.mxu1 %v1463_v47 }
  0x86   :  { %1227 = vmatprep.mubr.msk.bf16.mxu0 %vm407_vm8, %v1128_v10 }
  0x88   :  { %1252 = vmatpush3.bf16.msra.mxu1 %v1324_v48 }
  0x89   :  { %1253 = vmatprep.subr.bf16.mxu1 %v1463_v47 }
  0x8c   :  { %1254 = vmatpush3.bf16.msra.mxu1 %v1325_v50 }
  0x8d   :  { %1228 = vmatmul.mubr.msk.bf16.vlgmr.msra.gmra.mrb[0].mxu0 %vm407_vm8, %v1129_v14  ;;  %1255 = vmatprep.subr.bf16.mxu1 %v1463_v47 }
  0x8e   :  { %1236 = vmatpush3.bf16.msra.mxu0 %v1317_v43  ;;  %1231 = vmatprep.mubr.msk.bf16.mxu0 %vm407_vm8, %v1130_v17  ;;  %v648_v43 = vsel %vm1735_vm12, %v1144_v62, %v647_v18 }
  0x8f   :  { %1237 = vmatprep.subr.bf16.mxu0 %v1320_v0  ;;  %v1149_v9 = vcombine.low %v648_v43, %v652_v45 }
  0x90   :  { %1256 = vmatpush3.bf16.msra.mxu1 %v1326_v15 }
  0x91   :  { %1257 = vmatprep.subr.bf16.mxu1 %v1463_v47 }
  0x92   :  { %1238 = vmatpush3.bf16.msra.mxu0 %v1320_v0 }
  0x94   :  { %1258 = vmatpush3.bf16.msra.mxu1 %v1327_v51 }
  0x95   :  { %1232 = vmatmul.mubr.msk.bf16.gmra.mrb[4].mxu0 %vm407_vm8, %v1131_v24  ;;  %1259 = vmatprep.subr.bf16.mxu1 %v1463_v47 }
  0x96   :  { %1239 = vmatprep.mubr.msk.bf16.mxu0 %vm407_vm8, %v1146_v34 }
  0x98   :  { %1260 = vmatpush3.bf16.msra.mxu1 %v1328_v52 }
  0x99   :  { %1261 = vmatprep.subr.bf16.mxu1 %v1463_v47 }
  0x9c   :  { %1262 = vmatpush3.bf16.msra.mxu1 %v1329_v53 }
  0x9d   :  { %1240 = vmatmul.mubr.msk.bf16.vlgmr.msra.gmra.mrb[0].mxu0 %vm407_vm8, %v1147_v41  ;;  %1267 = vmatprep.subr.bf16.mxu1 %v1463_v47 }
  0x9e   :  { %1243 = vmatprep.mubr.msk.bf16.mxu0 %vm407_vm8, %v1148_v56 }
  0xa5   :  { %1244 = vmatmul.mubr.msk.bf16.gmra.mrb[4].mxu0 %vm407_vm8, %v1149_v9 }
 0x170   :  { %v1241_v54 = vpop.f32.mrb[0].mxu0 }
 0x171   :  { %v779_v57 = vrot.slane %v1241_v54, 4  ;;  %v728_v58 = vpop.f32.mrb[1].mxu0 }
 0x172   :  { %v767_v59 = vrot.slane %v728_v58, 4  ;;  %v1242_v60 = vpop.f32.mrb[2].mxu0 }
 0x173   :  { %v780_v61 = vmax.f32 %v1241_v54, %v779_v57  ;;  %v785_v63 = vrot.slane %v1242_v60, 4  ;;  %v731_v3 = vpop.f32.mrb[3].mxu0 }
 0x174   :  { %v768_v4 = vmax.f32 %v728_v58, %v767_v59  ;;  %v773_v5 = vrot.slane %v731_v3, 4 }
 0x175   :  { %v781_v6 = vrot.slane %v780_v61, 2  ;;  %v786_v8 = vmax.f32 %v1242_v60, %v785_v63 }
 0x176   :  { %v769_v10 = vrot.slane %v768_v4, 2  ;;  %v774_v11 = vmax.f32 %v731_v3, %v773_v5 }
 0x177   :  { %v782_v12 = vmax.f32 %v780_v61, %v781_v6  ;;  %v787_v13 = vrot.slane %v786_v8, 2 }
 0x178   :  { %v770_v14 = vmax.f32 %v768_v4, %v769_v10  ;;  %v775_v17 = vrot.slane %v774_v11, 2  ;;  %v1245_v31 = vpop.f32.mrb[4].mxu0 }
 0x179   :  { %v783_v19 = vrot.slane %v782_v12, 1  ;;  %v788_v0 = vmax.f32 %v786_v8, %v787_v13  ;;  %v803_v1 = vrot.slane %v1245_v31, 4  ;;  %v744_v20 = vpop.f32.mrb[5].mxu0 }
 0x17a   :  { %v771_v28 = vrot.slane %v770_v14, 1  ;;  %v776_v29 = vmax.f32 %v774_v11, %v775_v17  ;;  %v791_v22 = vrot.slane %v744_v20, 4  ;;  %v1246_v2 = vpop.f32.mrb[6].mxu0 }
 0x17b   :  { %v784_v7 = vmax.f32 %v782_v12, %v783_v19  ;;  %v789_v44 = vrot.slane %v788_v0, 1  ;;  %v804_v49 = vmax.f32 %v1245_v31, %v803_v1  ;;  %v809_v23 = vrot.slane %v1246_v2, 4  ;;  %v747_v24 = vpop.f32.mrb[7].mxu0 }
 0x17c   :  { %v772_v25 = vmax.f32 %v770_v14, %v771_v28  ;;  %v777_v27 = vrot.slane %v776_v29, 1  ;;  %v792_v32 = vmax.f32 %v744_v20, %v791_v22  ;;  %v797_v34 = vrot.slane %v747_v24, 4 }
 0x17d   :  { %v824_v35 = vadd.f32 %v1156_v21, %v784_v7  ;;  %v790_v36 = vmax.f32 %v788_v0, %v789_v44  ;;  %v805_v37 = vrot.slane %v804_v49, 2  ;;  %v810_v30 = vmax.f32 %v1246_v2, %v809_v23 }
 0x17e   :  { %v822_v33 = vadd.f32 %v1156_v21, %v772_v25  ;;  %v778_v38 = vmax.f32 %v776_v29, %v777_v27  ;;  %v793_v39 = vrot.slane %v792_v32, 2  ;;  %v798_v55 = vmax.f32 %v747_v24, %v797_v34  ;;  %v1330_v24 = vld [vmem:[#allocation9] sm:$0xff]   ;;  %v1331_v27 = vld [vmem:[#allocation9 + $0x8] sm:$0xff]   ;;  %v1333_v34 = vld [vmem:[#allocation9 + $0x18] sm:$0xff]  }
 0x17f   :  { %v832_v40 = vpack.c.bf16 %v824_v35, %v824_v35  ;;  %v825_v41 = vadd.f32 %v1156_v21, %v790_v36  ;;  %v806_v56 = vmax.f32 %v804_v49, %v805_v37  ;;  %v811_v62 = vrot.slane %v810_v30, 2  ;;  %v1334_v35 = vld [vmem:[#allocation9 + $0x20] sm:$0xff]   ;;  %v1335_v36 = vld [vmem:[#allocation9 + $0x28] sm:$0xff]   ;;  %v1336_v37 = vld [vmem:[#allocation9 + $0x30] sm:$0xff]  }
 0x180   :  { %v823_v18 = vadd.f32 %v1156_v21, %v778_v38  ;;  %v794_v26 = vmax.f32 %v792_v32, %v793_v39  ;;  %v799_v42 = vrot.slane %v798_v55, 2  ;;  %v830_v16 = vpack.c.bf16 %v822_v33, %v822_v33  ;;  %v1332_v32 = vld [vmem:[#allocation9 + $0x10] sm:$0xff]  }
 0x181   :  { %v833_v43 = vpack.c.bf16 %v825_v41, %v825_v41  ;;  %v807_v45 = vrot.slane %v806_v56, 1  ;;  %v812_v9 = vmax.f32 %v810_v30, %v811_v62  ;;  %v871_v15 = vunpack.c.l.b16 %v832_v40  ;;  %v1337_v30 = vld [vmem:[#allocation9 + $0x38] sm:$0xff]   ;;  %v1157_v33 = vld [vmem:[%s1813_s4] ss:$0 sm:$0xff]  ;;  %s1426_s4 = scalar_lea.vmem %s1108_s30, 128 }
 0x182   :  { %v831_v46 = vpack.c.bf16 %v823_v18, %v823_v18  ;;  %v795_v48 = vrot.slane %v794_v26, 1  ;;  %v800_v50 = vmax.f32 %v798_v55, %v799_v42  ;;  %v869_v61 = vunpack.c.l.b16 %v830_v16  ;;  %v1166_v62 = vld [vmem:[%s1815_s6] ss:$0 sm:$0xff]  ;;  %p1427_p4 = scmp.ne.s32.totalorder %s1108_s30, %s1426_s4  ;;  %p1432_p6 = scmp.lt.s32.totalorder %s1426_s4, %s1426_s4 }
 0x183   :  { %v808_v51 = vmax.f32 %v806_v56, %v807_v45  ;;  %v813_v52 = vrot.slane %v812_v9, 1  ;;  %v872_v53 = vunpack.c.l.b16 %v833_v43  ;;  %v880_v5 = vrot.slane %v871_v15, 6 }
 0x184   :  { %v870_v54 = vunpack.c.l.b16 %v831_v46  ;;  %v796_v57 = vmax.f32 %v794_v26, %v795_v48  ;;  %v801_v58 = vrot.slane %v800_v50, 1  ;;  %p1433_p7 = por %p1432_p6, %p1431_p5 }
 0x185   :  { %v828_v59 = vadd.f32 %v1156_v21, %v808_v51  ;;  %v814_v60 = vmax.f32 %v812_v9, %v813_v52  ;;  %v883_v10 = vrot.slane %v872_v53, 5 }
 0x186   :  { %v877_v63 = vrot.slane %v870_v54, 7  ;;  %v826_v3 = vadd.f32 %v1156_v21, %v796_v57  ;;  %v802_v4 = vmax.f32 %v800_v50, %v801_v58  ;;  %p1434_p8 = pnand %p1433_p7, %p1427_p4 }
 0x187   :  { %v836_v6 = vpack.c.bf16 %v828_v59, %v828_v59  ;;  %v829_v8 = vadd.f32 %v1156_v21, %v814_v60 }
 0x188   :  { %v879_v11 = vsel %vm878_vm14, %v877_v63, %v869_v61  ;;  %v834_v12 = vpack.c.bf16 %v826_v3, %v826_v3  ;;  %v827_v13 = vadd.f32 %v1156_v21, %v802_v4 }
 0x189   :  { %v837_v14 = vpack.c.bf16 %v829_v8, %v829_v8  ;;  %v882_v17 = vsel %vm881_vm15, %v880_v5, %v879_v11  ;;  %v875_v1 = vunpack.c.l.b16 %v836_v6 }
 0x18a   :  { %v873_v31 = vunpack.c.l.b16 %v834_v12  ;;  %v835_v19 = vpack.c.bf16 %v827_v13, %v827_v13  ;;  %v885_v0 = vsel %vm884_vm0, %v883_v10, %v882_v17 }
 0x18b   :  { %v876_v28 = vunpack.c.l.b16 %v837_v14  ;;  %v892_v7 = vrot.slane %v875_v1, 2 }
 0x18c   :  { %v886_v20 = vrot.slane %v873_v31, 4  ;;  %v874_v29 = vunpack.c.l.b16 %v835_v19 }
 0x18d   :  { %v895_v49 = vrot.slane %v876_v28, 1 }
 0x18e   :  { %v889_v22 = vrot.slane %v874_v29, 3  ;;  %v888_v2 = vsel %vm887_vm1, %v886_v20, %v885_v0 }
 0x190   :  { %v891_v44 = vsel %vm890_vm2, %v889_v22, %v888_v2 }
 0x191   :  { %v894_v23 = vsel %vm893_vm3, %v892_v7, %v891_v44 }
 0x192   :  { %v897_v21 = vsel %vm896_vm4, %v895_v49, %v894_v23 }
 0x193   :  { %v898_v25 = vpack.c.b16 %v897_v21, %v897_v21 }
 0x195   :  { %1264 = vmatmul.mubr.bf16.vlgmr.msra.gmra.mrb[0].mxu1 %v898_v25 }
 0x196   :  { %1268 = vmatpush3.bf16.msra.mxu1 %v1330_v24  ;;  %1283 = vmatprep.mubr.msk.bf16.mxu1 %vm1464_vm13, %v1463_v47 }
 0x197   :  { %1269 = vmatprep.subr.bf16.mxu1 %v1463_v47 }
 0x19a   :  { %1270 = vmatpush3.bf16.msra.mxu1 %v1331_v27 }
 0x19b   :  { %1271 = vmatprep.subr.bf16.mxu1 %v1463_v47 }
 0x19e   :  { %1272 = vmatpush3.bf16.msra.mxu1 %v1332_v32 }
 0x19f   :  { %1273 = vmatprep.subr.bf16.mxu1 %v1463_v47 }
 0x1a2   :  { %1274 = vmatpush3.bf16.msra.mxu1 %v1333_v34 }
 0x1a3   :  { %1275 = vmatprep.subr.bf16.mxu1 %v1463_v47 }
 0x1a6   :  { %1276 = vmatpush3.bf16.msra.mxu1 %v1334_v35 }
 0x1a7   :  { %1277 = vmatprep.subr.bf16.mxu1 %v1463_v47 }
 0x1aa   :  { %1278 = vmatpush3.bf16.msra.mxu1 %v1335_v36 }
 0x1ab   :  { %1279 = vmatprep.subr.bf16.mxu1 %v1463_v47 }
 0x1ae   :  { %1280 = vmatpush3.bf16.msra.mxu1 %v1336_v37 }
 0x1af   :  { %1281 = vmatprep.subr.bf16.mxu1 %v1463_v47 }
 0x1b2   :  { %1282 = vmatpush3.bf16.msra.mxu1 %v1337_v30 }
 0x268   :  { %v982_v38 = vpop.f32.mrb[0].mxu1 }
 0x269   :  { %v983_v39 = vadd.f32 %v1157_v33, %v982_v38  ;;  %v1265_v55 = vpop.f32.mrb[1].mxu1 }
 0x26a   :  { %v985_v40 = vpop.f32.mrb[2].mxu1 }
 0x26b   :  { %v988_v41 = vpack.c.bf16 %v983_v39, %v983_v39  ;;  %v1266_v56 = vpop.f32.mrb[3].mxu1 }
 0x26d   :  { %1284 = vmatmul.mubr.bf16.vlgmr.msra.gmra.mrb[4].mxu1 %v988_v41 }
 0x340   :  { %v1094_v47 = vpop.f32.mrb[4].mxu1 }
 0x341   :  { %v1095_v18 = vadd.f32 %v1166_v62, %v1094_v47  ;;  %v1285_v26 = vpop.f32.mrb[5].mxu1 }
 0x342   :  { %v1097_v42 = vpop.f32.mrb[6].mxu1 }
 0x343   :  { %1100 = vst [vmem:[#allocation11] sm:$0xff] %v1095_v18  ;;  %v1286_v43 = vpop.f32.mrb[7].mxu1 }
 0x344   :  { %1437 = shalt.err (!%p1434_p8)
}
 0x345   :  { %s1438_s6 = scalar_lea.hbm %s1816_s7, 128 }
 0x346   :  { %p1439_p9 = scmp.ne.s32.totalorder %s1816_s7, %s1438_s6  ;;  %p1442_p10 = scmp.lt.u32.totalorder %s1438_s6, %s1816_s7 }
 0x348   :  { %p1444_p11 = pnand %p1442_p10, %p1439_p9 }
 0x34a   :  { %1447 = shalt.err (!%p1444_p11)
}
 0x34b   :  { %1110 = dma.vmem_to_hbm [thread:$0]  %s1108_s30, 128, %s1816_s7, [#allocation5]  }
 0x34c   :  { %1454 = dma.done.wait [#allocation5], 128  }
 0x34d   :  { %1455 = vsyncadd [#allocation5], 4294967168 }
 0x34e   :  { %1114 = vsyncpa [#allocation4], 1 }
 0x34f   :  { %1115 = vsyncpa [#allocation7], 1 }
 0x350   :  { %1116 = vsyncpa [#allocation10], 1 }
 0x351   :  { %1117 = vsyncpa [#allocation5], 1 }

</bundles_post_ra>
